<compile_context>
chip_gen: v7x
topology: tpu7x:2x2x1
jax: 0.10.0
libtpu: 0.0.40
codegen_flags: <defaults>
</compile_context>

<pallas_src>
import functools

import jax
import jax.numpy as jnp
import numpy as np
from jax import lax
from jax.experimental import pallas as pl
from jax.experimental.pallas import tpu as pltpu


def _residual_kernel(x_ref, w1_ref, w2_ref, bias_ref, masks_ref, out_ref, *,
                     H, W):
    # x_ref    : (C, H*W)     f32  one image, channel-major, pixels on lanes
    # w1_ref   : (9, C, C)    f32  conv1 weights, tap-major, BN1 scale folded
    # w2_ref   : (9, C, C)    f32  conv2 weights, tap-major, BN2 scale folded
    # bias_ref : (2, C, H*W)  f32  folded conv+BN biases, pre-broadcast
    # masks_ref: (9, C, H*W)  f32  0/1 border masks per tap (trace-time const)
    # out_ref  : (C, H*W)
    C, N = x_ref.shape
    x = x_ref[...]

    def conv3x3(feat, w_ref, bias_row):
        # acc starts at the folded bias -> the bias add is free.
        acc = bias_row
        for t in range(9):
            dh, dw = t // 3 - 1, t % 3 - 1
            offset = dh * W + dw
            # Lane rotation (XLU). Wrapped lanes are always image-border
            # positions for a 3x3 / pad-1 conv with H, W >= 3, and the
            # precomputed mask zeroes exactly those lanes.
            if offset == 0:
                shifted = feat
            else:
                shifted = pltpu.roll(feat, shift=(-offset) % N, axis=1)
            tap = shifted * masks_ref[t]
            acc = acc + jnp.dot(w_ref[t], tap,
                                preferred_element_type=jnp.float32)
        return acc

    # conv1 (3x3, pad 1) + bn1 + relu
    y1 = jnp.maximum(conv3x3(x, w1_ref, bias_ref[0]), 0.0)
    # conv2 (3x3, pad 1) + bn2
    y2 = conv3x3(y1, w2_ref, bias_ref[1])
    # residual add + relu
    out_ref[...] = jnp.maximum(y2 + x, 0.0).astype(out_ref.dtype)


def residual_forward(x_nchw, w1, cb1, w2, cb2,
                     g1, be1, m1, v1, g2, be2, m2, v2, eps=1e-5):
    """ResNet basic block forward (use_1conv=False, stride=1), BN in eval mode.

    x_nchw: (B, C, H, W) float32.  Conv weights are HWIO.  Returns (B, C, H, W).
    """
    B, C, H, W = x_nchw.shape
    # Guard: the roll-based shift trick is only valid for a 3x3 / pad-1 / stride-1
    # conv with H, W >= 3 (every wrapped lane is then a masked border position).
    assert H >= 3 and W >= 3, "roll-based 3x3 im2col requires H, W >= 3"
    HW = H * W

    # Fold conv bias + BatchNorm (inference) into per-channel scale / bias,
    # then fold the scale into the conv weights so the kernel only adds a bias.
    s1 = g1 / jnp.sqrt(v1 + eps)
    b1 = s1 * (cb1 - m1) + be1
    s2 = g2 / jnp.sqrt(v2 + eps)
    b2 = s2 * (cb2 - m2) + be2

    # HWIO (3,3,Cin,Cout) -> tap-major (9, Cout, Cin), rows scaled by BN scale.
    w1m = jnp.transpose(w1, (0, 1, 3, 2)).reshape(9, C, C) * s1[None, :, None]
    w2m = jnp.transpose(w2, (0, 1, 3, 2)).reshape(9, C, C) * s2[None, :, None]

    # Folded biases pre-broadcast to full lane width (used as accumulator init).
    bias = jnp.stack([jnp.broadcast_to(b1[:, None], (C, HW)),
                      jnp.broadcast_to(b2[:, None], (C, HW))])

    # Per-tap border-validity masks, built once at trace time (0/1 f32).
    hh, ww = np.meshgrid(np.arange(H), np.arange(W), indexing="ij")
    hh = hh.reshape(-1)
    ww = ww.reshape(-1)
    masks_np = np.zeros((9, C, HW), np.float32)
    for t in range(9):
        dh, dw = t // 3 - 1, t % 3 - 1
        valid = ((hh >= -dh) & (hh < H - dh) &
                 (ww >= -dw) & (ww < W - dw))
        masks_np[t] = valid.astype(np.float32)[None, :]
    masks = jnp.asarray(masks_np)

    # Free reshape of NCHW — no HBM transpose of the activation.
    x3 = x_nchw.reshape(B, C, HW)

    kernel = functools.partial(_residual_kernel, H=H, W=W)
    out = pl.pallas_call(
        kernel,
        out_shape=jax.ShapeDtypeStruct((B, C, HW), x_nchw.dtype),
        grid=(B,),
        in_specs=[
            pl.BlockSpec((None, C, HW), lambda b: (b, 0, 0)),   # one image/step
            pl.BlockSpec((9, C, C), lambda b: (0, 0, 0)),       # weights (const)
            pl.BlockSpec((9, C, C), lambda b: (0, 0, 0)),
            pl.BlockSpec((2, C, HW), lambda b: (0, 0, 0)),      # biases (const)
            pl.BlockSpec((9, C, HW), lambda b: (0, 0, 0)),      # masks (const)
        ],
        out_specs=pl.BlockSpec((None, C, HW), lambda b: (b, 0, 0)),
        compiler_params=pltpu.CompilerParams(
            dimension_semantics=("parallel",)),
    )(x3, w1m, w2m, bias, masks)

    # Output is already channel-major per image -> reshape only, no transpose.
    return out.reshape(B, C, H, W)


# -------------------------- reference (plain JAX) --------------------------
def _conv3x3_ref(x_nhwc, w_hwio, bias):
    y = lax.conv_general_dilated(
        x_nhwc, w_hwio, window_strides=(1, 1), padding=((1, 1), (1, 1)),
        dimension_numbers=("NHWC", "HWIO", "NHWC"))
    return y + bias


def _bn_ref(x, gamma, beta, mean, var, eps=1e-5):
    return (x - mean) * (gamma / jnp.sqrt(var + eps)) + beta


def residual_reference(x_nchw, p):
    x = jnp.transpose(x_nchw, (0, 2, 3, 1))
    y = _conv3x3_ref(x, p["w1"], p["cb1"])
    y = jnp.maximum(_bn_ref(y, p["g1"], p["be1"], p["m1"], p["v1"]), 0.0)
    y = _conv3x3_ref(y, p["w2"], p["cb2"])
    y = _bn_ref(y, p["g2"], p["be2"], p["m2"], p["v2"])
    y = jnp.maximum(y + x, 0.0)
    return jnp.transpose(y, (0, 3, 1, 2))


if __name__ == "__main__":
    B, C, H, W = 2, 8, 16, 16          # input_channels == num_channels (no conv3)
    key = jax.random.PRNGKey(0)
    ks = jax.random.split(key, 12)

    x = jax.random.normal(ks[0], (B, C, H, W), jnp.float32)

    # conv weights in HWIO layout, conv biases
    w1 = 0.1 * jax.random.normal(ks[1], (3, 3, C, C), jnp.float32)
    cb1 = 0.05 * jax.random.normal(ks[2], (C,), jnp.float32)
    w2 = 0.1 * jax.random.normal(ks[3], (3, 3, C, C), jnp.float32)
    cb2 = 0.05 * jax.random.normal(ks[4], (C,), jnp.float32)

    # batchnorm parameters + running stats (inference mode)
    g1 = 1.0 + 0.1 * jax.random.normal(ks[5], (C,), jnp.float32)
    be1 = 0.05 * jax.random.normal(ks[6], (C,), jnp.float32)
    m1 = 0.02 * jax.random.normal(ks[7], (C,), jnp.float32)
    v1 = 1.0 + 0.1 * jax.random.uniform(ks[8], (C,), jnp.float32)
    g2 = 1.0 + 0.1 * jax.random.normal(ks[9], (C,), jnp.float32)
    be2 = 0.05 * jax.random.normal(ks[10], (C,), jnp.float32)
    m2 = 0.02 * jax.random.normal(ks[11], (C,), jnp.float32)
    v2 = 1.0 + 0.05 * jnp.arange(C, dtype=jnp.float32) / C

    out = residual_forward(x, w1, cb1, w2, cb2,
                           g1, be1, m1, v1, g2, be2, m2, v2)
    out = jax.block_until_ready(out)

    ref = residual_reference(x, dict(w1=w1, cb1=cb1, w2=w2, cb2=cb2,
                                     g1=g1, be1=be1, m1=m1, v1=v1,
                                     g2=g2, be2=be2, m2=m2, v2=v2))
    np.testing.assert_allclose(np.asarray(out), np.asarray(ref),
                               rtol=1e-3, atol=1e-3)
    print("KERNEL_OK")
</pallas_src>

<mosaic_0001>
module attributes {stable_mosaic.version = 11 : i64} {
  func.func @_residual_kernel(%arg0: i32, %arg1: memref<1x8x256xf32, #tpu.memory_space<vmem>>, %arg2: memref<9x8x8xf32, #tpu.memory_space<vmem>>, %arg3: memref<9x8x8xf32, #tpu.memory_space<vmem>>, %arg4: memref<2x8x256xf32, #tpu.memory_space<vmem>>, %arg5: memref<9x8x256xf32, #tpu.memory_space<vmem>>, %arg6: memref<1x8x256xf32, #tpu.memory_space<vmem>>) attributes {dimension_semantics = [#tpu.dimension_semantics<parallel>], iteration_bounds = array<i64: 2>, scalar_prefetch = 0 : i64, scratch_operands = 0 : i64, tpu.core_type = #tpu.core_type<tc>, window_params = [{transform_indices = @transform_0, window_bounds = array<i64: 1, 8, 256>}, {pipeline_mode = #tpu.pipeline_mode<synchronous>, transform_indices = @transform_1, window_bounds = array<i64: 9, 8, 8>}, {pipeline_mode = #tpu.pipeline_mode<synchronous>, transform_indices = @transform_2, window_bounds = array<i64: 9, 8, 8>}, {pipeline_mode = #tpu.pipeline_mode<synchronous>, transform_indices = @transform_3, window_bounds = array<i64: 2, 8, 256>}, {pipeline_mode = #tpu.pipeline_mode<synchronous>, transform_indices = @transform_4, window_bounds = array<i64: 9, 8, 256>}, {transform_indices = @transform_5, window_bounds = array<i64: 1, 8, 256>}]} {
    %c0 = arith.constant 0 : index
    %c0_0 = arith.constant 0 : index
    %c0_1 = arith.constant 0 : index
    %0 = vector.load %arg1[%c0, %c0_0, %c0_1] : memref<1x8x256xf32, #tpu.memory_space<vmem>>, vector<1x8x256xf32>
    %1 = vector.shape_cast %0 : vector<1x8x256xf32> to vector<8x256xf32>
    %c0_2 = arith.constant 0 : index
    %c0_3 = arith.constant 0 : index
    %c0_4 = arith.constant 0 : index
    %2 = vector.load %arg4[%c0_2, %c0_3, %c0_4] : memref<2x8x256xf32, #tpu.memory_space<vmem>>, vector<1x8x256xf32>
    %3 = vector.shape_cast %2 : vector<1x8x256xf32> to vector<8x256xf32>
    %c17_i32 = arith.constant 17 : i32
    %4 = tpu.dynamic_rotate %1 by %c17_i32 dim 1 : vector<8x256xf32>, i32 -> vector<8x256xf32>
    %c0_5 = arith.constant 0 : index
    %c0_6 = arith.constant 0 : index
    %c0_7 = arith.constant 0 : index
    %5 = vector.load %arg5[%c0_5, %c0_6, %c0_7] : memref<9x8x256xf32, #tpu.memory_space<vmem>>, vector<1x8x256xf32>
    %6 = vector.shape_cast %5 : vector<1x8x256xf32> to vector<8x256xf32>
    %7 = arith.mulf %4, %6 : vector<8x256xf32>
    %c0_8 = arith.constant 0 : index
    %c0_9 = arith.constant 0 : index
    %c0_10 = arith.constant 0 : index
    %8 = vector.load %arg2[%c0_8, %c0_9, %c0_10] : memref<9x8x8xf32, #tpu.memory_space<vmem>>, vector<1x8x8xf32>
    %9 = vector.shape_cast %8 : vector<1x8x8xf32> to vector<8x8xf32>
    %cst = arith.constant dense<0.000000e+00> : vector<8x256xf32>
    %10 = tpu.matmul %9, %7, %cst {dimension_numbers = #tpu.dot_dimension_numbers<[1], [0], [0], [1], [0, 0, 1, 1], [], []>} : vector<8x8xf32>, vector<8x256xf32>, vector<8x256xf32> -> vector<8x256xf32>
    %11 = arith.addf %3, %10 : vector<8x256xf32>
    %c16_i32 = arith.constant 16 : i32
    %12 = tpu.dynamic_rotate %1 by %c16_i32 dim 1 : vector<8x256xf32>, i32 -> vector<8x256xf32>
    %c1 = arith.constant 1 : index
    %c0_11 = arith.constant 0 : index
    %c0_12 = arith.constant 0 : index
    %13 = vector.load %arg5[%c1, %c0_11, %c0_12] : memref<9x8x256xf32, #tpu.memory_space<vmem>>, vector<1x8x256xf32>
    %14 = vector.shape_cast %13 : vector<1x8x256xf32> to vector<8x256xf32>
    %15 = arith.mulf %12, %14 : vector<8x256xf32>
    %c1_13 = arith.constant 1 : index
    %c0_14 = arith.constant 0 : index
    %c0_15 = arith.constant 0 : index
    %16 = vector.load %arg2[%c1_13, %c0_14, %c0_15] : memref<9x8x8xf32, #tpu.memory_space<vmem>>, vector<1x8x8xf32>
    %17 = vector.shape_cast %16 : vector<1x8x8xf32> to vector<8x8xf32>
    %cst_16 = arith.constant dense<0.000000e+00> : vector<8x256xf32>
    %18 = tpu.matmul %17, %15, %cst_16 {dimension_numbers = #tpu.dot_dimension_numbers<[1], [0], [0], [1], [0, 0, 1, 1], [], []>} : vector<8x8xf32>, vector<8x256xf32>, vector<8x256xf32> -> vector<8x256xf32>
    %19 = arith.addf %11, %18 : vector<8x256xf32>
    %c15_i32 = arith.constant 15 : i32
    %20 = tpu.dynamic_rotate %1 by %c15_i32 dim 1 : vector<8x256xf32>, i32 -> vector<8x256xf32>
    %c2 = arith.constant 2 : index
    %c0_17 = arith.constant 0 : index
    %c0_18 = arith.constant 0 : index
    %21 = vector.load %arg5[%c2, %c0_17, %c0_18] : memref<9x8x256xf32, #tpu.memory_space<vmem>>, vector<1x8x256xf32>
    %22 = vector.shape_cast %21 : vector<1x8x256xf32> to vector<8x256xf32>
    %23 = arith.mulf %20, %22 : vector<8x256xf32>
    %c2_19 = arith.constant 2 : index
    %c0_20 = arith.constant 0 : index
    %c0_21 = arith.constant 0 : index
    %24 = vector.load %arg2[%c2_19, %c0_20, %c0_21] : memref<9x8x8xf32, #tpu.memory_space<vmem>>, vector<1x8x8xf32>
    %25 = vector.shape_cast %24 : vector<1x8x8xf32> to vector<8x8xf32>
    %cst_22 = arith.constant dense<0.000000e+00> : vector<8x256xf32>
    %26 = tpu.matmul %25, %23, %cst_22 {dimension_numbers = #tpu.dot_dimension_numbers<[1], [0], [0], [1], [0, 0, 1, 1], [], []>} : vector<8x8xf32>, vector<8x256xf32>, vector<8x256xf32> -> vector<8x256xf32>
    %27 = arith.addf %19, %26 : vector<8x256xf32>
    %c1_i32 = arith.constant 1 : i32
    %28 = tpu.dynamic_rotate %1 by %c1_i32 dim 1 : vector<8x256xf32>, i32 -> vector<8x256xf32>
    %c3 = arith.constant 3 : index
    %c0_23 = arith.constant 0 : index
    %c0_24 = arith.constant 0 : index
    %29 = vector.load %arg5[%c3, %c0_23, %c0_24] : memref<9x8x256xf32, #tpu.memory_space<vmem>>, vector<1x8x256xf32>
    %30 = vector.shape_cast %29 : vector<1x8x256xf32> to vector<8x256xf32>
    %31 = arith.mulf %28, %30 : vector<8x256xf32>
    %c3_25 = arith.constant 3 : index
    %c0_26 = arith.constant 0 : index
    %c0_27 = arith.constant 0 : index
    %32 = vector.load %arg2[%c3_25, %c0_26, %c0_27] : memref<9x8x8xf32, #tpu.memory_space<vmem>>, vector<1x8x8xf32>
    %33 = vector.shape_cast %32 : vector<1x8x8xf32> to vector<8x8xf32>
    %cst_28 = arith.constant dense<0.000000e+00> : vector<8x256xf32>
    %34 = tpu.matmul %33, %31, %cst_28 {dimension_numbers = #tpu.dot_dimension_numbers<[1], [0], [0], [1], [0, 0, 1, 1], [], []>} : vector<8x8xf32>, vector<8x256xf32>, vector<8x256xf32> -> vector<8x256xf32>
    %35 = arith.addf %27, %34 : vector<8x256xf32>
    %c4 = arith.constant 4 : index
    %c0_29 = arith.constant 0 : index
    %c0_30 = arith.constant 0 : index
    %36 = vector.load %arg5[%c4, %c0_29, %c0_30] : memref<9x8x256xf32, #tpu.memory_space<vmem>>, vector<1x8x256xf32>
    %37 = vector.shape_cast %36 : vector<1x8x256xf32> to vector<8x256xf32>
    %38 = arith.mulf %1, %37 : vector<8x256xf32>
    %c4_31 = arith.constant 4 : index
    %c0_32 = arith.constant 0 : index
    %c0_33 = arith.constant 0 : index
    %39 = vector.load %arg2[%c4_31, %c0_32, %c0_33] : memref<9x8x8xf32, #tpu.memory_space<vmem>>, vector<1x8x8xf32>
    %40 = vector.shape_cast %39 : vector<1x8x8xf32> to vector<8x8xf32>
    %cst_34 = arith.constant dense<0.000000e+00> : vector<8x256xf32>
    %41 = tpu.matmul %40, %38, %cst_34 {dimension_numbers = #tpu.dot_dimension_numbers<[1], [0], [0], [1], [0, 0, 1, 1], [], []>} : vector<8x8xf32>, vector<8x256xf32>, vector<8x256xf32> -> vector<8x256xf32>
    %42 = arith.addf %35, %41 : vector<8x256xf32>
    %c255_i32 = arith.constant 255 : i32
    %43 = tpu.dynamic_rotate %1 by %c255_i32 dim 1 : vector<8x256xf32>, i32 -> vector<8x256xf32>
    %c5 = arith.constant 5 : index
    %c0_35 = arith.constant 0 : index
    %c0_36 = arith.constant 0 : index
    %44 = vector.load %arg5[%c5, %c0_35, %c0_36] : memref<9x8x256xf32, #tpu.memory_space<vmem>>, vector<1x8x256xf32>
    %45 = vector.shape_cast %44 : vector<1x8x256xf32> to vector<8x256xf32>
    %46 = arith.mulf %43, %45 : vector<8x256xf32>
    %c5_37 = arith.constant 5 : index
    %c0_38 = arith.constant 0 : index
    %c0_39 = arith.constant 0 : index
    %47 = vector.load %arg2[%c5_37, %c0_38, %c0_39] : memref<9x8x8xf32, #tpu.memory_space<vmem>>, vector<1x8x8xf32>
    %48 = vector.shape_cast %47 : vector<1x8x8xf32> to vector<8x8xf32>
    %cst_40 = arith.constant dense<0.000000e+00> : vector<8x256xf32>
    %49 = tpu.matmul %48, %46, %cst_40 {dimension_numbers = #tpu.dot_dimension_numbers<[1], [0], [0], [1], [0, 0, 1, 1], [], []>} : vector<8x8xf32>, vector<8x256xf32>, vector<8x256xf32> -> vector<8x256xf32>
    %50 = arith.addf %42, %49 : vector<8x256xf32>
    %c241_i32 = arith.constant 241 : i32
    %51 = tpu.dynamic_rotate %1 by %c241_i32 dim 1 : vector<8x256xf32>, i32 -> vector<8x256xf32>
    %c6 = arith.constant 6 : index
    %c0_41 = arith.constant 0 : index
    %c0_42 = arith.constant 0 : index
    %52 = vector.load %arg5[%c6, %c0_41, %c0_42] : memref<9x8x256xf32, #tpu.memory_space<vmem>>, vector<1x8x256xf32>
    %53 = vector.shape_cast %52 : vector<1x8x256xf32> to vector<8x256xf32>
    %54 = arith.mulf %51, %53 : vector<8x256xf32>
    %c6_43 = arith.constant 6 : index
    %c0_44 = arith.constant 0 : index
    %c0_45 = arith.constant 0 : index
    %55 = vector.load %arg2[%c6_43, %c0_44, %c0_45] : memref<9x8x8xf32, #tpu.memory_space<vmem>>, vector<1x8x8xf32>
    %56 = vector.shape_cast %55 : vector<1x8x8xf32> to vector<8x8xf32>
    %cst_46 = arith.constant dense<0.000000e+00> : vector<8x256xf32>
    %57 = tpu.matmul %56, %54, %cst_46 {dimension_numbers = #tpu.dot_dimension_numbers<[1], [0], [0], [1], [0, 0, 1, 1], [], []>} : vector<8x8xf32>, vector<8x256xf32>, vector<8x256xf32> -> vector<8x256xf32>
    %58 = arith.addf %50, %57 : vector<8x256xf32>
    %c240_i32 = arith.constant 240 : i32
    %59 = tpu.dynamic_rotate %1 by %c240_i32 dim 1 : vector<8x256xf32>, i32 -> vector<8x256xf32>
    %c7 = arith.constant 7 : index
    %c0_47 = arith.constant 0 : index
    %c0_48 = arith.constant 0 : index
    %60 = vector.load %arg5[%c7, %c0_47, %c0_48] : memref<9x8x256xf32, #tpu.memory_space<vmem>>, vector<1x8x256xf32>
    %61 = vector.shape_cast %60 : vector<1x8x256xf32> to vector<8x256xf32>
    %62 = arith.mulf %59, %61 : vector<8x256xf32>
    %c7_49 = arith.constant 7 : index
    %c0_50 = arith.constant 0 : index
    %c0_51 = arith.constant 0 : index
    %63 = vector.load %arg2[%c7_49, %c0_50, %c0_51] : memref<9x8x8xf32, #tpu.memory_space<vmem>>, vector<1x8x8xf32>
    %64 = vector.shape_cast %63 : vector<1x8x8xf32> to vector<8x8xf32>
    %cst_52 = arith.constant dense<0.000000e+00> : vector<8x256xf32>
    %65 = tpu.matmul %64, %62, %cst_52 {dimension_numbers = #tpu.dot_dimension_numbers<[1], [0], [0], [1], [0, 0, 1, 1], [], []>} : vector<8x8xf32>, vector<8x256xf32>, vector<8x256xf32> -> vector<8x256xf32>
    %66 = arith.addf %58, %65 : vector<8x256xf32>
    %c239_i32 = arith.constant 239 : i32
    %67 = tpu.dynamic_rotate %1 by %c239_i32 dim 1 : vector<8x256xf32>, i32 -> vector<8x256xf32>
    %c8 = arith.constant 8 : index
    %c0_53 = arith.constant 0 : index
    %c0_54 = arith.constant 0 : index
    %68 = vector.load %arg5[%c8, %c0_53, %c0_54] : memref<9x8x256xf32, #tpu.memory_space<vmem>>, vector<1x8x256xf32>
    %69 = vector.shape_cast %68 : vector<1x8x256xf32> to vector<8x256xf32>
    %70 = arith.mulf %67, %69 : vector<8x256xf32>
    %c8_55 = arith.constant 8 : index
    %c0_56 = arith.constant 0 : index
    %c0_57 = arith.constant 0 : index
    %71 = vector.load %arg2[%c8_55, %c0_56, %c0_57] : memref<9x8x8xf32, #tpu.memory_space<vmem>>, vector<1x8x8xf32>
    %72 = vector.shape_cast %71 : vector<1x8x8xf32> to vector<8x8xf32>
    %cst_58 = arith.constant dense<0.000000e+00> : vector<8x256xf32>
    %73 = tpu.matmul %72, %70, %cst_58 {dimension_numbers = #tpu.dot_dimension_numbers<[1], [0], [0], [1], [0, 0, 1, 1], [], []>} : vector<8x8xf32>, vector<8x256xf32>, vector<8x256xf32> -> vector<8x256xf32>
    %74 = arith.addf %66, %73 : vector<8x256xf32>
    %cst_59 = arith.constant 0.000000e+00 : f32
    %75 = vector.broadcast %cst_59 : f32 to vector<8x256xf32>
    %76 = arith.maximumf %74, %75 : vector<8x256xf32>
    %c1_60 = arith.constant 1 : index
    %c0_61 = arith.constant 0 : index
    %c0_62 = arith.constant 0 : index
    %77 = vector.load %arg4[%c1_60, %c0_61, %c0_62] : memref<2x8x256xf32, #tpu.memory_space<vmem>>, vector<1x8x256xf32>
    %78 = vector.shape_cast %77 : vector<1x8x256xf32> to vector<8x256xf32>
    %c17_i32_63 = arith.constant 17 : i32
    %79 = tpu.dynamic_rotate %76 by %c17_i32_63 dim 1 : vector<8x256xf32>, i32 -> vector<8x256xf32>
    %c0_64 = arith.constant 0 : index
    %c0_65 = arith.constant 0 : index
    %c0_66 = arith.constant 0 : index
    %80 = vector.load %arg5[%c0_64, %c0_65, %c0_66] : memref<9x8x256xf32, #tpu.memory_space<vmem>>, vector<1x8x256xf32>
    %81 = vector.shape_cast %80 : vector<1x8x256xf32> to vector<8x256xf32>
    %82 = arith.mulf %79, %81 : vector<8x256xf32>
    %c0_67 = arith.constant 0 : index
    %c0_68 = arith.constant 0 : index
    %c0_69 = arith.constant 0 : index
    %83 = vector.load %arg3[%c0_67, %c0_68, %c0_69] : memref<9x8x8xf32, #tpu.memory_space<vmem>>, vector<1x8x8xf32>
    %84 = vector.shape_cast %83 : vector<1x8x8xf32> to vector<8x8xf32>
    %cst_70 = arith.constant dense<0.000000e+00> : vector<8x256xf32>
    %85 = tpu.matmul %84, %82, %cst_70 {dimension_numbers = #tpu.dot_dimension_numbers<[1], [0], [0], [1], [0, 0, 1, 1], [], []>} : vector<8x8xf32>, vector<8x256xf32>, vector<8x256xf32> -> vector<8x256xf32>
    %86 = arith.addf %78, %85 : vector<8x256xf32>
    %c16_i32_71 = arith.constant 16 : i32
    %87 = tpu.dynamic_rotate %76 by %c16_i32_71 dim 1 : vector<8x256xf32>, i32 -> vector<8x256xf32>
    %c1_72 = arith.constant 1 : index
    %c0_73 = arith.constant 0 : index
    %c0_74 = arith.constant 0 : index
    %88 = vector.load %arg5[%c1_72, %c0_73, %c0_74] : memref<9x8x256xf32, #tpu.memory_space<vmem>>, vector<1x8x256xf32>
    %89 = vector.shape_cast %88 : vector<1x8x256xf32> to vector<8x256xf32>
    %90 = arith.mulf %87, %89 : vector<8x256xf32>
    %c1_75 = arith.constant 1 : index
    %c0_76 = arith.constant 0 : index
    %c0_77 = arith.constant 0 : index
    %91 = vector.load %arg3[%c1_75, %c0_76, %c0_77] : memref<9x8x8xf32, #tpu.memory_space<vmem>>, vector<1x8x8xf32>
    %92 = vector.shape_cast %91 : vector<1x8x8xf32> to vector<8x8xf32>
    %cst_78 = arith.constant dense<0.000000e+00> : vector<8x256xf32>
    %93 = tpu.matmul %92, %90, %cst_78 {dimension_numbers = #tpu.dot_dimension_numbers<[1], [0], [0], [1], [0, 0, 1, 1], [], []>} : vector<8x8xf32>, vector<8x256xf32>, vector<8x256xf32> -> vector<8x256xf32>
    %94 = arith.addf %86, %93 : vector<8x256xf32>
    %c15_i32_79 = arith.constant 15 : i32
    %95 = tpu.dynamic_rotate %76 by %c15_i32_79 dim 1 : vector<8x256xf32>, i32 -> vector<8x256xf32>
    %c2_80 = arith.constant 2 : index
    %c0_81 = arith.constant 0 : index
    %c0_82 = arith.constant 0 : index
    %96 = vector.load %arg5[%c2_80, %c0_81, %c0_82] : memref<9x8x256xf32, #tpu.memory_space<vmem>>, vector<1x8x256xf32>
    %97 = vector.shape_cast %96 : vector<1x8x256xf32> to vector<8x256xf32>
    %98 = arith.mulf %95, %97 : vector<8x256xf32>
    %c2_83 = arith.constant 2 : index
    %c0_84 = arith.constant 0 : index
    %c0_85 = arith.constant 0 : index
    %99 = vector.load %arg3[%c2_83, %c0_84, %c0_85] : memref<9x8x8xf32, #tpu.memory_space<vmem>>, vector<1x8x8xf32>
    %100 = vector.shape_cast %99 : vector<1x8x8xf32> to vector<8x8xf32>
    %cst_86 = arith.constant dense<0.000000e+00> : vector<8x256xf32>
    %101 = tpu.matmul %100, %98, %cst_86 {dimension_numbers = #tpu.dot_dimension_numbers<[1], [0], [0], [1], [0, 0, 1, 1], [], []>} : vector<8x8xf32>, vector<8x256xf32>, vector<8x256xf32> -> vector<8x256xf32>
    %102 = arith.addf %94, %101 : vector<8x256xf32>
    %c1_i32_87 = arith.constant 1 : i32
    %103 = tpu.dynamic_rotate %76 by %c1_i32_87 dim 1 : vector<8x256xf32>, i32 -> vector<8x256xf32>
    %c3_88 = arith.constant 3 : index
    %c0_89 = arith.constant 0 : index
    %c0_90 = arith.constant 0 : index
    %104 = vector.load %arg5[%c3_88, %c0_89, %c0_90] : memref<9x8x256xf32, #tpu.memory_space<vmem>>, vector<1x8x256xf32>
    %105 = vector.shape_cast %104 : vector<1x8x256xf32> to vector<8x256xf32>
    %106 = arith.mulf %103, %105 : vector<8x256xf32>
    %c3_91 = arith.constant 3 : index
    %c0_92 = arith.constant 0 : index
    %c0_93 = arith.constant 0 : index
    %107 = vector.load %arg3[%c3_91, %c0_92, %c0_93] : memref<9x8x8xf32, #tpu.memory_space<vmem>>, vector<1x8x8xf32>
    %108 = vector.shape_cast %107 : vector<1x8x8xf32> to vector<8x8xf32>
    %cst_94 = arith.constant dense<0.000000e+00> : vector<8x256xf32>
    %109 = tpu.matmul %108, %106, %cst_94 {dimension_numbers = #tpu.dot_dimension_numbers<[1], [0], [0], [1], [0, 0, 1, 1], [], []>} : vector<8x8xf32>, vector<8x256xf32>, vector<8x256xf32> -> vector<8x256xf32>
    %110 = arith.addf %102, %109 : vector<8x256xf32>
    %c4_95 = arith.constant 4 : index
    %c0_96 = arith.constant 0 : index
    %c0_97 = arith.constant 0 : index
    %111 = vector.load %arg5[%c4_95, %c0_96, %c0_97] : memref<9x8x256xf32, #tpu.memory_space<vmem>>, vector<1x8x256xf32>
    %112 = vector.shape_cast %111 : vector<1x8x256xf32> to vector<8x256xf32>
    %113 = arith.mulf %76, %112 : vector<8x256xf32>
    %c4_98 = arith.constant 4 : index
    %c0_99 = arith.constant 0 : index
    %c0_100 = arith.constant 0 : index
    %114 = vector.load %arg3[%c4_98, %c0_99, %c0_100] : memref<9x8x8xf32, #tpu.memory_space<vmem>>, vector<1x8x8xf32>
    %115 = vector.shape_cast %114 : vector<1x8x8xf32> to vector<8x8xf32>
    %cst_101 = arith.constant dense<0.000000e+00> : vector<8x256xf32>
    %116 = tpu.matmul %115, %113, %cst_101 {dimension_numbers = #tpu.dot_dimension_numbers<[1], [0], [0], [1], [0, 0, 1, 1], [], []>} : vector<8x8xf32>, vector<8x256xf32>, vector<8x256xf32> -> vector<8x256xf32>
    %117 = arith.addf %110, %116 : vector<8x256xf32>
    %c255_i32_102 = arith.constant 255 : i32
    %118 = tpu.dynamic_rotate %76 by %c255_i32_102 dim 1 : vector<8x256xf32>, i32 -> vector<8x256xf32>
    %c5_103 = arith.constant 5 : index
    %c0_104 = arith.constant 0 : index
    %c0_105 = arith.constant 0 : index
    %119 = vector.load %arg5[%c5_103, %c0_104, %c0_105] : memref<9x8x256xf32, #tpu.memory_space<vmem>>, vector<1x8x256xf32>
    %120 = vector.shape_cast %119 : vector<1x8x256xf32> to vector<8x256xf32>
    %121 = arith.mulf %118, %120 : vector<8x256xf32>
    %c5_106 = arith.constant 5 : index
    %c0_107 = arith.constant 0 : index
    %c0_108 = arith.constant 0 : index
    %122 = vector.load %arg3[%c5_106, %c0_107, %c0_108] : memref<9x8x8xf32, #tpu.memory_space<vmem>>, vector<1x8x8xf32>
    %123 = vector.shape_cast %122 : vector<1x8x8xf32> to vector<8x8xf32>
    %cst_109 = arith.constant dense<0.000000e+00> : vector<8x256xf32>
    %124 = tpu.matmul %123, %121, %cst_109 {dimension_numbers = #tpu.dot_dimension_numbers<[1], [0], [0], [1], [0, 0, 1, 1], [], []>} : vector<8x8xf32>, vector<8x256xf32>, vector<8x256xf32> -> vector<8x256xf32>
    %125 = arith.addf %117, %124 : vector<8x256xf32>
    %c241_i32_110 = arith.constant 241 : i32
    %126 = tpu.dynamic_rotate %76 by %c241_i32_110 dim 1 : vector<8x256xf32>, i32 -> vector<8x256xf32>
    %c6_111 = arith.constant 6 : index
    %c0_112 = arith.constant 0 : index
    %c0_113 = arith.constant 0 : index
    %127 = vector.load %arg5[%c6_111, %c0_112, %c0_113] : memref<9x8x256xf32, #tpu.memory_space<vmem>>, vector<1x8x256xf32>
    %128 = vector.shape_cast %127 : vector<1x8x256xf32> to vector<8x256xf32>
    %129 = arith.mulf %126, %128 : vector<8x256xf32>
    %c6_114 = arith.constant 6 : index
    %c0_115 = arith.constant 0 : index
    %c0_116 = arith.constant 0 : index
    %130 = vector.load %arg3[%c6_114, %c0_115, %c0_116] : memref<9x8x8xf32, #tpu.memory_space<vmem>>, vector<1x8x8xf32>
    %131 = vector.shape_cast %130 : vector<1x8x8xf32> to vector<8x8xf32>
    %cst_117 = arith.constant dense<0.000000e+00> : vector<8x256xf32>
    %132 = tpu.matmul %131, %129, %cst_117 {dimension_numbers = #tpu.dot_dimension_numbers<[1], [0], [0], [1], [0, 0, 1, 1], [], []>} : vector<8x8xf32>, vector<8x256xf32>, vector<8x256xf32> -> vector<8x256xf32>
    %133 = arith.addf %125, %132 : vector<8x256xf32>
    %c240_i32_118 = arith.constant 240 : i32
    %134 = tpu.dynamic_rotate %76 by %c240_i32_118 dim 1 : vector<8x256xf32>, i32 -> vector<8x256xf32>
    %c7_119 = arith.constant 7 : index
    %c0_120 = arith.constant 0 : index
    %c0_121 = arith.constant 0 : index
    %135 = vector.load %arg5[%c7_119, %c0_120, %c0_121] : memref<9x8x256xf32, #tpu.memory_space<vmem>>, vector<1x8x256xf32>
    %136 = vector.shape_cast %135 : vector<1x8x256xf32> to vector<8x256xf32>
    %137 = arith.mulf %134, %136 : vector<8x256xf32>
    %c7_122 = arith.constant 7 : index
    %c0_123 = arith.constant 0 : index
    %c0_124 = arith.constant 0 : index
    %138 = vector.load %arg3[%c7_122, %c0_123, %c0_124] : memref<9x8x8xf32, #tpu.memory_space<vmem>>, vector<1x8x8xf32>
    %139 = vector.shape_cast %138 : vector<1x8x8xf32> to vector<8x8xf32>
    %cst_125 = arith.constant dense<0.000000e+00> : vector<8x256xf32>
    %140 = tpu.matmul %139, %137, %cst_125 {dimension_numbers = #tpu.dot_dimension_numbers<[1], [0], [0], [1], [0, 0, 1, 1], [], []>} : vector<8x8xf32>, vector<8x256xf32>, vector<8x256xf32> -> vector<8x256xf32>
    %141 = arith.addf %133, %140 : vector<8x256xf32>
    %c239_i32_126 = arith.constant 239 : i32
    %142 = tpu.dynamic_rotate %76 by %c239_i32_126 dim 1 : vector<8x256xf32>, i32 -> vector<8x256xf32>
    %c8_127 = arith.constant 8 : index
    %c0_128 = arith.constant 0 : index
    %c0_129 = arith.constant 0 : index
    %143 = vector.load %arg5[%c8_127, %c0_128, %c0_129] : memref<9x8x256xf32, #tpu.memory_space<vmem>>, vector<1x8x256xf32>
    %144 = vector.shape_cast %143 : vector<1x8x256xf32> to vector<8x256xf32>
    %145 = arith.mulf %142, %144 : vector<8x256xf32>
    %c8_130 = arith.constant 8 : index
    %c0_131 = arith.constant 0 : index
    %c0_132 = arith.constant 0 : index
    %146 = vector.load %arg3[%c8_130, %c0_131, %c0_132] : memref<9x8x8xf32, #tpu.memory_space<vmem>>, vector<1x8x8xf32>
    %147 = vector.shape_cast %146 : vector<1x8x8xf32> to vector<8x8xf32>
    %cst_133 = arith.constant dense<0.000000e+00> : vector<8x256xf32>
    %148 = tpu.matmul %147, %145, %cst_133 {dimension_numbers = #tpu.dot_dimension_numbers<[1], [0], [0], [1], [0, 0, 1, 1], [], []>} : vector<8x8xf32>, vector<8x256xf32>, vector<8x256xf32> -> vector<8x256xf32>
    %149 = arith.addf %141, %148 : vector<8x256xf32>
    %150 = arith.addf %149, %1 : vector<8x256xf32>
    %cst_134 = arith.constant 0.000000e+00 : f32
    %151 = vector.broadcast %cst_134 : f32 to vector<8x256xf32>
    %152 = arith.maximumf %150, %151 : vector<8x256xf32>
    %c0_135 = arith.constant 0 : index
    %c0_136 = arith.constant 0 : index
    %c0_137 = arith.constant 0 : index
    %153 = vector.load %arg6[%c0_135, %c0_136, %c0_137] : memref<1x8x256xf32, #tpu.memory_space<vmem>>, vector<1x8x256xf32>
    %154 = vector.shape_cast %153 : vector<1x8x256xf32> to vector<8x256xf32>
    %155 = vector.shape_cast %152 : vector<8x256xf32> to vector<1x8x256xf32>
    tpu.vector_store %arg6[%c0_135, %c0_136, %c0_137], %155 {strides = array<i32>} : memref<1x8x256xf32, #tpu.memory_space<vmem>>, vector<1x8x256xf32>,
    return
  }
  func.func @transform_0(%arg0: i32) -> (i32, i32, i32) {
    %c0_i32 = arith.constant 0 : i32
    %c0_i32_0 = arith.constant 0 : i32
    %c0_i32_1 = arith.constant 0 : i32
    return %arg0, %c0_i32, %c0_i32_0 : i32, i32, i32
  }
  func.func @transform_1(%arg0: i32) -> (i32, i32, i32) {
    %c0_i32 = arith.constant 0 : i32
    %c0_i32_0 = arith.constant 0 : i32
    %c0_i32_1 = arith.constant 0 : i32
    %c0_i32_2 = arith.constant 0 : i32
    return %c0_i32, %c0_i32_0, %c0_i32_1 : i32, i32, i32
  }
  func.func @transform_2(%arg0: i32) -> (i32, i32, i32) {
    %c0_i32 = arith.constant 0 : i32
    %c0_i32_0 = arith.constant 0 : i32
    %c0_i32_1 = arith.constant 0 : i32
    %c0_i32_2 = arith.constant 0 : i32
    return %c0_i32, %c0_i32_0, %c0_i32_1 : i32, i32, i32
  }
  func.func @transform_3(%arg0: i32) -> (i32, i32, i32) {
    %c0_i32 = arith.constant 0 : i32
    %c0_i32_0 = arith.constant 0 : i32
    %c0_i32_1 = arith.constant 0 : i32
    %c0_i32_2 = arith.constant 0 : i32
    return %c0_i32, %c0_i32_0, %c0_i32_1 : i32, i32, i32
  }
  func.func @transform_4(%arg0: i32) -> (i32, i32, i32) {
    %c0_i32 = arith.constant 0 : i32
    %c0_i32_0 = arith.constant 0 : i32
    %c0_i32_1 = arith.constant 0 : i32
    %c0_i32_2 = arith.constant 0 : i32
    return %c0_i32, %c0_i32_0, %c0_i32_1 : i32, i32, i32
  }
  func.func @transform_5(%arg0: i32) -> (i32, i32, i32) {
    %c0_i32 = arith.constant 0 : i32
    %c0_i32_0 = arith.constant 0 : i32
    %c0_i32_1 = arith.constant 0 : i32
    return %arg0, %c0_i32, %c0_i32_0 : i32, i32, i32
  }
}

</mosaic_0001>

<bundles_post_ra>
// kernel: tpu_custom_call.1
= control target key start
LH: loop header
LB: loop body
LE: loop exit
PB: predicated region body
PF: predicated region fallthrough
CT: control target
= control target key end

     0   :  { %10 = vsyncpa [#allocation3], 0  ;;  %s2606_s0 = inlined_call_operand.vmem [shape: f32[2,8,256], index: 0, kind: input, shape index: {}]   ;;  %s2607_s1 = inlined_call_operand.vmem [shape: f32[9,8,8], index: 1, kind: input, shape index: {}]   ;;  %s2608_s2 = inlined_call_operand.vmem [shape: f32[9,8,8], index: 2, kind: input, shape index: {}]   ;;  %s2609_s3 = inlined_call_operand.vmem [shape: f32[2,8,256], index: 3, kind: input, shape index: {}]   ;;  %s2610_s4 = inlined_call_operand.vmem [shape: f32[9,8,256], index: 4, kind: input, shape index: {}]   ;;  %s2611_s5 = inlined_call_operand.hbm [shape: f32[2,8,256], index: 5, kind: output, shape index: {}]  }
   0x1   :  { %12 = vsyncpa [#allocation3 + $0x1], 0  ;;  %s2137_s18 = smov 0   ;;  %s2139_s19 = smov 0  }
   0x2   :  { %s2141_s20 = smov 0   ;;  %s2143_s21 = smov 0  }
   0x3 LB: > { %s2158_s22 = sadd.s32 4294967295, %s2095_s21   ;;  %s1883_s23 = sadd.s32 4294967294, %s2095_s21   ;;  %s2095_s21 = sphi %s2143_s21, %s2617_s21   ;;  %s2091_s20 = sphi %s2141_s20, %s2616_s20   ;;  %s2087_s19 = sphi %s2139_s19, %s2615_s19   ;;  %s2083_s18 = sphi %s2137_s18, %s2614_s18  }
   0x4   : > { %s2162_s24 = sadd.s32 1, %s2095_s21   ;;  %s135_s25 = sadd.s32 1, %s2091_s20 }
   0x5   : > { %s132_s26 = ssub.s32 %s2095_s21, %s2162_s24  ;;  %p145_p0 = scmp.ne.s32.totalorder %s2091_s20, %s2087_s19 }
   0x6   : > { %p133_p1 = scmp.eq.s32.totalorder %s132_s26, 0  ;;  %p146_p2 = scmp.eq.s32.totalorder %s2158_s22, 1 }
   0x7   : > { %p151_p3 = scmp.ne.s32.totalorder %s2087_s19, %s2083_s18  ;;  %p152_p4 = scmp.eq.s32.totalorder %s1883_s23, 1 }
   0x8   : > { %s2173_s27 = scalar_select %p133_p1, %s2091_s20, %s135_s25  }
   0x9   : > { %p2175_p5 = por %p146_p2, %p145_p0  ;;  %p2179_p6 = por %p152_p4, %p151_p3 }
   0xa   : > { %p1886_p7 = scmp.ge.s32.totalorder %s2095_s21, 1  ;;  %p190_p8 = scmp.lt.s32.totalorder %s2095_s21, 3 }
   0xc   : > { %p191_p9 = pnand %p1886_p7, %p190_p8 }
   0xd   : > { %p218_p10 = scmp.lt.s32.totalorder (!%p191_p9), %s2158_s22, 1  ;;  %v2097_v0 = vmov (!%p191_p9), 0.0   ;;  %s2098_s10 = smov (!%p191_p9), 16   ;;  %v231_v3 = vlaneseq (!%p191_p9)  ;;  %v2235_v7 = vld [vmem:[%s2610_s4 + $0x18] sm:$0xff] (!%p191_p9)  ;;  %v2240_v8 = vld [vmem:[%s2610_s4 + $0x8] sm:$0xff] (!%p191_p9)  ;;  %v2245_v9 = vld [vmem:[%s2610_s4] sm:$0xff] (!%p191_p9) }
   0xe   : > { %194 = sbr.rel (%p191_p9) target bundleno = 848 (0x350), region = 40  ;;  %309 = vmatprep.mubr.f32.mxu0 (!%p191_p9), %v2097_v0  ;;  %1112 = vmatprep.mubr.f32.mxu1 (!%p191_p9), %v2097_v0  ;;  %s2099_s11 = smov (!%p191_p9), 17   ;;  %v2250_v10 = vld [vmem:[%s2610_s4 + $0x10] sm:$0xff] (!%p191_p9)  ;;  %v240_v21 = vld [vmem:[%s2607_s1] sm:$0xff] (!%p191_p9)  ;;  %vm241_vm3 = vcmask (!%p191_p9), 64512   ;;  %v2271_v22 = vld [vmem:[%s2610_s4 + $0x28] sm:$0xff] (!%p191_p9) }
   0xf   : > { %s2100_s12 = smov (!%p191_p9), 15   ;;  %s2101_s13 = smov (!%p191_p9), 1   ;;  %v2228_v4 = vand.u32 (!%p191_p9), 127, %v231_v3  ;;  %v2282_v27 = vld [vmem:[%s2610_s4 + $0x20] sm:$0xff] (!%p191_p9)  ;;  %v2289_v31 = vld [vmem:[%s2610_s4 + $0x38] sm:$0xff] (!%p191_p9)  ;;  %v1893_v34 = vld [vmem:[%s2607_s1 + $0x8] sm:$0xff] (!%p191_p9) }
  0x10   : > { %s2102_s14 = smov (!%p191_p9), 127   ;;  %s2103_s15 = smov (!%p191_p9), 113   ;;  %v2303_v36 = vld [vmem:[%s2610_s4 + $0x30] sm:$0xff] (!%p191_p9)  ;;  %v2310_v38 = vld [vmem:[%s2610_s4 + $0x48] sm:$0xff] (!%p191_p9)  ;;  %v2324_v44 = vld [vmem:[%s2610_s4 + $0x40] sm:$0xff] (!%p191_p9) }
  0x11   : > { %s2104_s16 = smov (!%p191_p9), 112   ;;  %s2105_s17 = smov (!%p191_p9), 111   ;;  %vm322_vm0 = vcmp.lt.s32.totalorder (!%p191_p9), %v2228_v4, 16  ;;  %vm233_vm1 = vcmp.lt.s32.totalorder (!%p191_p9), %v2228_v4, 17  ;;  %vm412_vm2 = vcmp.lt.s32.totalorder (!%p191_p9), %v2228_v4, 15  ;;  %vm502_vm4 = vcmp.lt.s32.totalorder (!%p191_p9), %v2228_v4, 1 }
  0x12   : > { %v1897_v40 = vld [vmem:[%s2607_s1 + $0x10] sm:$0xff] (!%p191_p9)  ;;  %vm675_vm5 = vcmp.lt.s32.totalorder (!%p191_p9), %v2228_v4, 127  ;;  %v2329_v45 = vld [vmem:[%s2610_s4 + $0x58] sm:$0xff] (!%p191_p9)  ;;  %vm765_vm6 = vcmp.lt.s32.totalorder (!%p191_p9), %v2228_v4, 113  ;;  %v2352_v54 = vld [vmem:[%s2610_s4 + $0x68] sm:$0xff] (!%p191_p9)  ;;  %vm855_vm7 = vcmp.lt.s32.totalorder (!%p191_p9), %v2228_v4, 112 }
  0x13   : > { %v1901_v47 = vld [vmem:[%s2607_s1 + $0x18] sm:$0xff] (!%p191_p9)  ;;  %v2345_v52 = vld [vmem:[%s2610_s4 + $0x50] sm:$0xff] (!%p191_p9)  ;;  %v1905_v57 = vld [vmem:[%s2607_s1 + $0x20] sm:$0xff] (!%p191_p9)  ;;  %vm945_vm8 = vcmp.lt.s32.totalorder (!%p191_p9), %v2228_v4, 111  ;;  %s1948_s26 = sshll.u32 (!%p191_p9), %s2158_s22, 8  ;;  %s2106_s25 = smov (!%p191_p9), [#allocation2]  }
  0x14   : > { %v2367_v61 = vld [vmem:[%s2610_s4 + $0x60] sm:$0xff] (!%p191_p9)  ;;  %v2374_v63 = vld [vmem:[%s2610_s4 + $0x78] sm:$0xff] (!%p191_p9)  ;;  %v1923_v4 = vld [vmem:[%s2609_s3 + $0x10] sm:$0xff] (!%p191_p9) }
  0x15   : > { %s219_s30 = scalar_select %p218_p10, %s2158_s22, 1 }
  0x17   : > { %s1947_s6 = sshll.u32 %s219_s30, 4 }
  0x18   : > { %s222_s9 = scalar_lea.vmem %s2606_s0, %s1947_s6 }
  0x19   : > { %v2192_v1 = vld [vmem:[%s222_s9] sm:$0xff]  ;;  %v2198_v2 = vld [vmem:[%s222_s9 + $0x8] sm:$0xff]  ;;  %s2564_s9 = scalar_lea.hbm %s2611_s5, %s1948_s26 }
  0x1a   : > { %318 = vrot.lane.b32.xlu1 %v2192_v1, %s2098_s10  ;;  %227 = vrot.lane.b32.xlu0 %v2192_v1, %s2099_s11  ;;  %v592_v41 = vmul.f32 %v2310_v38, %v2198_v2  ;;  %v591_v48 = vmul.f32 %v2324_v44, %v2192_v1 }
  0x1e   : > { %320 = vrot.lane.b32.xlu1 %v2198_v2, %s2098_s10  ;;  %229 = vrot.lane.b32.xlu0 %v2198_v2, %s2099_s11 }
  0x22   : > { %410 = vrot.lane.b32.xlu1 %v2198_v2, %s2100_s12  ;;  %408 = vrot.lane.b32.xlu0 %v2192_v1, %s2100_s12 }
  0x26   : > { %500 = vrot.lane.b32.xlu1 %v2198_v2, %s2101_s13  ;;  %498 = vrot.lane.b32.xlu0 %v2192_v1, %s2101_s13 }
  0x2a   : > { %673 = vrot.lane.b32.xlu1 %v2198_v2, %s2102_s14  ;;  %671 = vrot.lane.b32.xlu0 %v2192_v1, %s2102_s14 }
  0x2e   : > { %763 = vrot.lane.b32.xlu1 %v2198_v2, %s2103_s15  ;;  %761 = vrot.lane.b32.xlu0 %v2192_v1, %s2103_s15 }
  0x32   : > { %853 = vrot.lane.b32.xlu1 %v2198_v2, %s2104_s16  ;;  %851 = vrot.lane.b32.xlu0 %v2192_v1, %s2104_s16 }
  0x36   : > { %943 = vrot.lane.b32.xlu1 %v2198_v2, %s2105_s17  ;;  %941 = vrot.lane.b32.xlu0 %v2192_v1, %s2105_s17 }
  0x8c   : > { %v319_v5 = vpop.permute.xlu1 %318  ;;  %v228_v6 = vpop.permute.xlu0 %227 }
  0x90   : > { %v321_v11 = vpop.permute.xlu1 %320  ;;  %v230_v12 = vpop.permute.xlu0 %229 }
  0x91   : > { %v323_v13 = vsel %vm322_vm0, %v319_v5, %v321_v11  ;;  %v324_v14 = vsel %vm322_vm0, %v321_v11, %v319_v5  ;;  %v235_v15 = vsel %vm233_vm1, %v230_v12, %v228_v6  ;;  %v234_v16 = vsel %vm233_vm1, %v228_v6, %v230_v12  ;;  %v1909_v6 = vld [vmem:[%s2607_s1 + $0x28] sm:$0xff] }
  0x92   : > { %v329_v17 = vmul.f32 %v2235_v7, %v323_v13  ;;  %v239_v18 = vmul.f32 %v2240_v8, %v234_v16  ;;  %v238_v19 = vmul.f32 %v2245_v9, %v235_v15  ;;  %v328_v20 = vmul.f32 %v2250_v10, %v324_v14  ;;  %v2389_v14 = vld [vmem:[%s2610_s4 + $0x70] sm:$0xff]  ;;  %v2396_v16 = vld [vmem:[%s2610_s4 + $0x88] sm:$0xff] }
  0x94   : > { %245 = vmatprep.subr.mxu0 %v239_v18  ;;  %v411_v23 = vpop.permute.xlu1 %410  ;;  %v409_v24 = vpop.permute.xlu0 %408 }
  0x95   : > { %246 = vmatpush1.msra.mxu0 %v238_v19  ;;  %v413_v25 = vsel %vm412_vm2, %v409_v24, %v411_v23  ;;  %v414_v28 = vsel %vm412_vm2, %v411_v23, %v409_v24  ;;  %v1913_v19 = vld [vmem:[%s2607_s1 + $0x30] sm:$0xff] }
  0x96   : > { %1890 = vmatmul.mubr.msk.f32.vlgmr.msra.gmra.mrb[0].mxu0 %vm241_vm3, %v240_v21  ;;  %335 = vmatprep.subr.mxu0 %v329_v17  ;;  %v419_v26 = vmul.f32 %v2271_v22, %v413_v25  ;;  %v418_v33 = vmul.f32 %v2282_v27, %v414_v28  ;;  %v2410_v21 = vld [vmem:[%s2610_s4 + $0x80] sm:$0xff]  ;;  %v1917_v25 = vld [vmem:[%s2607_s1 + $0x38] sm:$0xff] }
  0x97   : > { %336 = vmatpush1.msra.mxu0 %v328_v20  ;;  %399 = vmatprep.mubr.f32.mxu0 %v2097_v0  ;;  %v225_v28 = vld [vmem:[%s2609_s3] sm:$0xff] }
  0x98   : > { %425 = vmatprep.subr.mxu0 %v419_v26  ;;  %v501_v29 = vpop.permute.xlu1 %500  ;;  %v499_v30 = vpop.permute.xlu0 %498  ;;  %v1921_v26 = vld [vmem:[%s2607_s1 + $0x40] sm:$0xff] }
  0x99   : > { %v503_v32 = vsel %vm502_vm4, %v499_v30, %v501_v29  ;;  %v504_v37 = vsel %vm502_vm4, %v501_v29, %v499_v30  ;;  %v226_v29 = vld [vmem:[%s2609_s3 + $0x8] sm:$0xff] }
  0x9a   : > { %v509_v35 = vmul.f32 %v2289_v31, %v503_v32  ;;  %v508_v39 = vmul.f32 %v2303_v36, %v504_v37 }
  0x9c   : > { %v674_v42 = vpop.permute.xlu1 %673  ;;  %v672_v43 = vpop.permute.xlu0 %671 }
  0x9d   : > { %v677_v46 = vsel %vm675_vm5, %v674_v42, %v672_v43  ;;  %v676_v53 = vsel %vm675_vm5, %v672_v43, %v674_v42 }
  0x9e   : > { %1894 = vmatmul.mubr.msk.f32.vlgmr.msra.gmra.mrb[0].mxu0 %vm241_vm3, %v1893_v34  ;;  %v682_v49 = vmul.f32 %v2329_v45, %v677_v46  ;;  %v681_v56 = vmul.f32 %v2345_v52, %v676_v53 }
  0x9f   : > { %426 = vmatpush1.msra.mxu0 %v418_v33  ;;  %489 = vmatprep.mubr.f32.mxu0 %v2097_v0 }
  0xa0   : > { %515 = vmatprep.subr.mxu0 %v509_v35  ;;  %v764_v50 = vpop.permute.xlu1 %763  ;;  %v762_v51 = vpop.permute.xlu0 %761 }
  0xa1   : > { %v767_v55 = vsel %vm765_vm6, %v764_v50, %v762_v51  ;;  %v766_v62 = vsel %vm765_vm6, %v762_v51, %v764_v50 }
  0xa2   : > { %v772_v58 = vmul.f32 %v2352_v54, %v767_v55  ;;  %v771_v5 = vmul.f32 %v2367_v61, %v766_v62 }
  0xa4   : > { %v854_v59 = vpop.permute.xlu1 %853  ;;  %v852_v60 = vpop.permute.xlu0 %851 }
  0xa5   : > { %v857_v3 = vsel %vm855_vm7, %v854_v59, %v852_v60  ;;  %v856_v15 = vsel %vm855_vm7, %v852_v60, %v854_v59 }
  0xa6   : > { %1898 = vmatmul.mubr.msk.f32.vlgmr.msra.gmra.mrb[0].mxu0 %vm241_vm3, %v1897_v40  ;;  %v862_v11 = vmul.f32 %v2374_v63, %v857_v3  ;;  %v861_v18 = vmul.f32 %v2389_v14, %v856_v15 }
  0xa7   : > { %516 = vmatpush1.msra.mxu0 %v508_v39  ;;  %579 = vmatprep.mubr.f32.mxu0 %v2097_v0 }
  0xa8   : > { %598 = vmatprep.subr.mxu0 %v592_v41  ;;  %v944_v12 = vpop.permute.xlu1 %943  ;;  %v942_v13 = vpop.permute.xlu0 %941 }
  0xa9   : > { %v947_v17 = vsel %vm945_vm8, %v944_v12, %v942_v13  ;;  %v946_v23 = vsel %vm945_vm8, %v942_v13, %v944_v12  ;;  %v1930_v13 = vld [vmem:[%s2608_s2 + $0x18] sm:$0xff] }
  0xaa   : > { %v952_v20 = vmul.f32 %v2396_v16, %v947_v17  ;;  %v951_v24 = vmul.f32 %v2410_v21, %v946_v23 }
  0xae   : > { %1902 = vmatmul.mubr.msk.f32.vlgmr.msra.gmra.mrb[0].mxu0 %vm241_vm3, %v1901_v47 }
  0xaf   : > { %599 = vmatpush1.msra.mxu0 %v591_v48  ;;  %662 = vmatprep.mubr.f32.mxu0 %v2097_v0  ;;  %v1044_v48 = vld [vmem:[%s2608_s2] sm:$0xff] }
  0xb0   : > { %688 = vmatprep.subr.mxu0 %v682_v49 }
  0xb6   : > { %1906 = vmatmul.mubr.msk.f32.vlgmr.msra.gmra.mrb[0].mxu0 %vm241_vm3, %v1905_v57 }
  0xb7   : > { %689 = vmatpush1.msra.mxu0 %v681_v56  ;;  %752 = vmatprep.mubr.f32.mxu0 %v2097_v0 }
  0xb8   : > { %778 = vmatprep.subr.mxu0 %v772_v58 }
  0xbe   : > { %1910 = vmatmul.mubr.msk.f32.vlgmr.msra.gmra.mrb[0].mxu0 %vm241_vm3, %v1909_v6 }
  0xbf   : > { %779 = vmatpush1.msra.mxu0 %v771_v5  ;;  %842 = vmatprep.mubr.f32.mxu0 %v2097_v0  ;;  %v1928_v5 = vld [vmem:[%s2608_s2 + $0x10] sm:$0xff] }
  0xc0   : > { %868 = vmatprep.subr.mxu0 %v862_v11 }
  0xc6   : > { %1914 = vmatmul.mubr.msk.f32.vlgmr.msra.gmra.mrb[0].mxu0 %vm241_vm3, %v1913_v19 }
  0xc7   : > { %869 = vmatpush1.msra.mxu0 %v861_v18  ;;  %932 = vmatprep.mubr.f32.mxu0 %v2097_v0 }
  0xc8   : > { %958 = vmatprep.subr.mxu0 %v952_v20 }
  0xce   : > { %1918 = vmatmul.mubr.msk.f32.vlgmr.msra.gmra.mrb[0].mxu0 %vm241_vm3, %v1917_v25 }
  0xcf   : > { %959 = vmatpush1.msra.mxu0 %v951_v24  ;;  %1022 = vmatprep.mubr.f32.mxu0 %v2097_v0 }
  0xd6   : > { %1922 = vmatmul.mubr.msk.f32.vlgmr.msra.gmra.mrb[0].mxu0 %vm241_vm3, %v1921_v26 }
 0x1a9   : > { %v1024_v30 = vpop.f32.mrb[0].mxu0 }
 0x1aa   : > { %v1949_v32 = vadd.f32 %v1024_v30, %v225_v28  ;;  %v1026_v33 = vpop.f32.mrb[1].mxu0 }
 0x1ab   : > { %v1950_v34 = vadd.f32 %v1026_v33, %v226_v29 }
 0x1ac   : > { %v2430_v35 = vmax.f32 %v1949_v32, 0.0 }
 0x1ad   : > { %v1032_v37 = vmax.f32 %v1950_v34, 0.0 }
 0x1ae   : > { %1036 = vrot.lane.b32.xlu0 %v2430_v35, %s2099_s11 }
 0x1af   : > { %1038 = vrot.lane.b32.xlu1 %v1032_v37, %s2099_s11  ;;  %v1380_v6 = vmul.f32 %v2310_v38, %v1032_v37 }
 0x1b2   : > { %1121 = vrot.lane.b32.xlu0 %v2430_v35, %s2098_s10 }
 0x1b3   : > { %1123 = vrot.lane.b32.xlu1 %v1032_v37, %s2098_s10  ;;  %s2037_s10 = sshll.u32 %s2106_s25, 4  ;;  %s2038_s10 = int_to_ptr.vmem [resolvable:$false] %s2037_s10 }
 0x1b4   : > { %s2039_s11 = scalar_lea.vmem %s2038_s10, 512 }
 0x1b6   : > { %1207 = vrot.lane.b32.xlu0 %v2430_v35, %s2100_s12 }
 0x1b7   : > { %1209 = vrot.lane.b32.xlu1 %v1032_v37, %s2100_s12  ;;  %s215_s12 = sand.u32 1, %s2087_s19  }
 0x1b8   : > { %s1810_s23 = scalar_lea.sflag [#allocation3], %s215_s12 }
 0x1ba   : > { %1293 = vrot.lane.b32.xlu0 %v2430_v35, %s2101_s13 }
 0x1bb   : > { %1295 = vrot.lane.b32.xlu1 %v1032_v37, %s2101_s13  ;;  %s1887_s13 = sshll.u32 %s215_s12, 4 }
 0x1bc   : > { %s217_s30 = scalar_lea.vmem [#allocation2], %s1887_s13 }
 0x1bd   : > { %s1824_s6 = sshll.u32 %s217_s30, 4  ;;  %s2566_s6 = int_to_ptr.vmem [resolvable:$true] %s1824_s6 }
 0x1be   : > { %1459 = vrot.lane.b32.xlu0 %v2430_v35, %s2102_s14  ;;  %s2033_s22 = scalar_lea.vmem %s2566_s6, 256  ;;  %p2040_p0 = scmp.lt.s32.totalorder %s2566_s6, %s2038_s10 }
 0x1bf   : > { %1461 = vrot.lane.b32.xlu1 %v1032_v37, %s2102_s14  ;;  %p2034_p11 = scmp.ne.s32.totalorder %s2566_s6, %s2033_s22  ;;  %p2041_p1 = scmp.lt.s32.totalorder %s2039_s11, %s2033_s22 }
 0x1c1   : > { %p2035_p12 = pnand %p2034_p11, %p2175_p5  ;;  %p2042_p2 = por %p2041_p1, %p2040_p0 }
 0x1c2   : > { %1545 = vrot.lane.b32.xlu0 %v2430_v35, %s2103_s15 }
 0x1c3   : > { %1547 = vrot.lane.b32.xlu1 %v1032_v37, %s2103_s15  ;;  %p2036_p13 = pneg %p2035_p12 }
 0x1c5   : > { %p2043_p3 = pnand %p2042_p2, %p2036_p13 }
 0x1c6   : > { %1631 = vrot.lane.b32.xlu0 %v2430_v35, %s2104_s16 }
 0x1c7   : > { %1633 = vrot.lane.b32.xlu1 %v1032_v37, %s2104_s16 }
 0x1ca   : > { %1717 = vrot.lane.b32.xlu0 %v2430_v35, %s2105_s17 }
 0x1cb   : > { %1719 = vrot.lane.b32.xlu1 %v1032_v37, %s2105_s17  ;;  %v1938_v37 = vld [vmem:[%s2608_s2 + $0x38] sm:$0xff] }
 0x220   : > { %v1037_v39 = vpop.permute.xlu0 %1036 }
 0x221   : > { %v1039_v40 = vpop.permute.xlu1 %1038 }
 0x222   : > { %v1041_v41 = vsel %vm233_vm1, %v1039_v40, %v1037_v39  ;;  %v1040_v42 = vsel %vm233_vm1, %v1037_v39, %v1039_v40 }
 0x223   : > { %v1043_v43 = vmul.f32 %v1040_v42, %v2240_v8  ;;  %v1042_v46 = vmul.f32 %v1041_v41, %v2245_v9 }
 0x224   : > { %v1122_v47 = vpop.permute.xlu0 %1121 }
 0x225   : > { %1048 = vmatprep.subr.mxu1 %v1043_v43  ;;  %v1124_v49 = vpop.permute.xlu1 %1123 }
 0x226   : > { %v1125_v50 = vsel %vm322_vm0, %v1122_v47, %v1124_v49  ;;  %v1126_v51 = vsel %vm322_vm0, %v1124_v49, %v1122_v47  ;;  %1049 = vmatpush1.msra.mxu1 %v1042_v46 }
 0x227   : > { %v1127_v53 = vmul.f32 %v2250_v10, %v1126_v51  ;;  %v1128_v8 = vmul.f32 %v2235_v7, %v1125_v50  ;;  %1925 = vmatmul.mubr.msk.f32.vlgmr.msra.gmra.mrb[0].mxu1 %vm241_vm3, %v1044_v48  ;;  %v1926_v7 = vld [vmem:[%s2608_s2 + $0x8] sm:$0xff] }
 0x228   : > { %v1208_v9 = vpop.permute.xlu0 %1207  ;;  %1198 = vmatprep.mubr.f32.mxu1 %v2097_v0 }
 0x229   : > { %1134 = vmatprep.subr.mxu1 %v1128_v8  ;;  %v1210_v55 = vpop.permute.xlu1 %1209 }
 0x22a   : > { %v1211_v56 = vsel %vm412_vm2, %v1208_v9, %v1210_v55  ;;  %1135 = vmatpush1.msra.mxu1 %v1127_v53  ;;  %v1212_v57 = vsel %vm412_vm2, %v1210_v55, %v1208_v9 }
 0x22b   : > { %v1214_v58 = vmul.f32 %v2271_v22, %v1211_v56  ;;  %v1213_v60 = vmul.f32 %v2282_v27, %v1212_v57 }
 0x22c   : > { %v1294_v59 = vpop.permute.xlu0 %1293 }
 0x22d   : > { %1220 = vmatprep.subr.mxu1 %v1214_v58  ;;  %v1296_v10 = vpop.permute.xlu1 %1295 }
 0x22e   : > { %v1297_v62 = vsel %vm502_vm4, %v1294_v59, %v1296_v10  ;;  %v1298_v22 = vsel %vm502_vm4, %v1296_v10, %v1294_v59 }
 0x22f   : > { %v1300_v3 = vmul.f32 %v2289_v31, %v1297_v62  ;;  %1927 = vmatmul.mubr.msk.f32.vlgmr.msra.gmra.mrb[0].mxu1 %vm241_vm3, %v1926_v7  ;;  %v1299_v27 = vmul.f32 %v2303_v36, %v1298_v22  ;;  %v1379_v36 = vmul.f32 %v2324_v44, %v2430_v35  ;;  %v1932_v44 = vld [vmem:[%s2608_s2 + $0x20] sm:$0xff] }
 0x230   : > { %1221 = vmatpush1.msra.mxu1 %v1213_v60  ;;  %1284 = vmatprep.mubr.f32.mxu1 %v2097_v0  ;;  %v1460_v31 = vpop.permute.xlu0 %1459 }
 0x231   : > { %1306 = vmatprep.subr.mxu1 %v1300_v3  ;;  %v1462_v11 = vpop.permute.xlu1 %1461 }
 0x232   : > { %v1464_v12 = vsel %vm675_vm5, %v1462_v11, %v1460_v31  ;;  %v1463_v18 = vsel %vm675_vm5, %v1460_v31, %v1462_v11 }
 0x233   : > { %v1466_v15 = vmul.f32 %v2329_v45, %v1464_v12  ;;  %v1465_v45 = vmul.f32 %v2345_v52, %v1463_v18  ;;  %v1934_v52 = vld [vmem:[%s2608_s2 + $0x28] sm:$0xff] }
 0x234   : > { %v1546_v38 = vpop.permute.xlu0 %1545 }
 0x235   : > { %v1548_v17 = vpop.permute.xlu1 %1547 }
 0x236   : > { %v1550_v19 = vsel %vm765_vm6, %v1548_v17, %v1546_v38  ;;  %v1549_v25 = vsel %vm765_vm6, %v1546_v38, %v1548_v17 }
 0x237   : > { %1929 = vmatmul.mubr.msk.f32.vlgmr.msra.gmra.mrb[0].mxu1 %vm241_vm3, %v1928_v5  ;;  %v1552_v20 = vmul.f32 %v2352_v54, %v1550_v19  ;;  %v1551_v54 = vmul.f32 %v2367_v61, %v1549_v25  ;;  %v1936_v61 = vld [vmem:[%s2608_s2 + $0x30] sm:$0xff] }
 0x238   : > { %1307 = vmatpush1.msra.mxu1 %v1299_v27  ;;  %1370 = vmatprep.mubr.f32.mxu1 %v2097_v0  ;;  %v1632_v23 = vpop.permute.xlu0 %1631 }
 0x239   : > { %1386 = vmatprep.subr.mxu1 %v1380_v6  ;;  %v1634_v24 = vpop.permute.xlu1 %1633 }
 0x23a   : > { %v1636_v26 = vsel %vm855_vm7, %v1634_v24, %v1632_v23  ;;  %v1635_v32 = vsel %vm855_vm7, %v1632_v23, %v1634_v24 }
 0x23b   : > { %v1638_v28 = vmul.f32 %v2374_v63, %v1636_v26  ;;  %v1637_v63 = vmul.f32 %v2389_v14, %v1635_v32  ;;  %v1940_v14 = vld [vmem:[%s2608_s2 + $0x40] sm:$0xff] }
 0x23c   : > { %v1718_v29 = vpop.permute.xlu0 %1717 }
 0x23d   : > { %v1720_v30 = vpop.permute.xlu1 %1719 }
 0x23e   : > { %v1722_v33 = vsel %vm945_vm8, %v1720_v30, %v1718_v29  ;;  %v1721_v35 = vsel %vm945_vm8, %v1718_v29, %v1720_v30 }
 0x23f   : > { %1931 = vmatmul.mubr.msk.f32.vlgmr.msra.gmra.mrb[0].mxu1 %vm241_vm3, %v1930_v13  ;;  %v1724_v34 = vmul.f32 %v2396_v16, %v1722_v33  ;;  %v1723_v39 = vmul.f32 %v2410_v21, %v1721_v35  ;;  %v1924_v16 = vld [vmem:[%s2609_s3 + $0x18] sm:$0xff] }
 0x240   : > { %1387 = vmatpush1.msra.mxu1 %v1379_v36  ;;  %1450 = vmatprep.mubr.f32.mxu1 %v2097_v0 }
 0x241   : > { %1472 = vmatprep.subr.mxu1 %v1466_v15 }
 0x247   : > { %1933 = vmatmul.mubr.msk.f32.vlgmr.msra.gmra.mrb[0].mxu1 %vm241_vm3, %v1932_v44 }
 0x248   : > { %1473 = vmatpush1.msra.mxu1 %v1465_v45  ;;  %1536 = vmatprep.mubr.f32.mxu1 %v2097_v0 }
 0x249   : > { %1558 = vmatprep.subr.mxu1 %v1552_v20 }
 0x24f   : > { %1935 = vmatmul.mubr.msk.f32.vlgmr.msra.gmra.mrb[0].mxu1 %vm241_vm3, %v1934_v52 }
 0x250   : > { %1559 = vmatpush1.msra.mxu1 %v1551_v54  ;;  %1622 = vmatprep.mubr.f32.mxu1 %v2097_v0 }
 0x251   : > { %1644 = vmatprep.subr.mxu1 %v1638_v28 }
 0x257   : > { %1937 = vmatmul.mubr.msk.f32.vlgmr.msra.gmra.mrb[0].mxu1 %vm241_vm3, %v1936_v61 }
 0x258   : > { %1645 = vmatpush1.msra.mxu1 %v1637_v63  ;;  %1708 = vmatprep.mubr.f32.mxu1 %v2097_v0 }
 0x259   : > { %1730 = vmatprep.subr.mxu1 %v1724_v34 }
 0x25f   : > { %1939 = vmatmul.mubr.msk.f32.vlgmr.msra.gmra.mrb[0].mxu1 %vm241_vm3, %v1938_v37 }
 0x260   : > { %1731 = vmatpush1.msra.mxu1 %v1723_v39  ;;  %1794 = vmatprep.mubr.f32.mxu1 %v2097_v0 }
 0x267   : > { %1941 = vmatmul.mubr.msk.f32.vlgmr.msra.gmra.mrb[0].mxu1 %vm241_vm3, %v1940_v14 }
 0x33a   : > { %v1796_v21 = vpop.f32.mrb[0].mxu1 }
 0x33b   : > { %v1951_v40 = vadd.f32 %v1923_v4, %v1796_v21  ;;  %v1798_v41 = vpop.f32.mrb[1].mxu1 }
 0x33c   : > { %v1952_v0 = vadd.f32 %v1924_v16, %v1798_v41 }
 0x33d   : > { %v1803_v42 = vadd.f32 %v1951_v40, %v2192_v1 }
 0x33e   : > { %v1804_v43 = vadd.f32 %v1952_v0, %v2198_v2 }
 0x33f   : > { %v1805_v46 = vmax.f32 %v1803_v42, 0.0 }
 0x340   : > { %v1806_v47 = vmax.f32 %v1804_v43, 0.0 }
 0x341   : > { %1807 = vst [vmem:[%s217_s30] sm:$0xff] %v1805_v46 }
 0x342   : > { %1808 = vst [vmem:[%s217_s30 + $0x8] sm:$0xff] %v1806_v47 }
 0x343   : > { %2046 = shalt.err (!%p2043_p3)
}
 0x344   : > { %s2047_s12 = scalar_lea.hbm %s2564_s9, 256  ;;  %s2051_s15 = scalar_lea.hbm %s2611_s5, 512 }
 0x345   : > { %p2048_p4 = scmp.ne.s32.totalorder %s2564_s9, %s2047_s12  ;;  %p2052_p9 = scmp.lt.u32.totalorder %s2564_s9, %s2611_s5 }
 0x346   : > { %p2053_p10 = scmp.lt.u32.totalorder %s2051_s15, %s2047_s12  ;;  %p2055_p12 = scmp.lt.u32.totalorder %s2047_s12, %s2564_s9 }
 0x347   : > { %p2049_p7 = pnand %p2048_p4, %p2175_p5 }
 0x348   : > { %p2054_p11 = por %p2053_p10, %p2052_p9 }
 0x349   : > { %p2050_p8 = pneg %p2049_p7 }
 0x34a   : > { %p2056_p13 = por %p2055_p12, %p2054_p11 }
 0x34c   : > { %p2057_p0 = pnand %p2056_p13, %p2050_p8 }
 0x34e   : > { %2060 = shalt.err (!%p2057_p0)
}
 0x34f   : > { %1985 = dma.vmem_to_hbm [thread:$0]  (%p2175_p5), %s2566_s6, 256, %s2564_s9, %s1810_s23  }
 0x350 PF: > { %p1991_p1 = scmp.ge.s32.totalorder %s2095_s21, 2  ;;  %s1836_s26 = sand.u32 1, %s2083_s18  }
 0x351   : > { %s1837_s30 = scalar_lea.sflag [#allocation3], %s1836_s26 }
 0x352   : > { %p1988_p2 = pnand %p1991_p1, %p2179_p6 }
 0x354   : > { %2078 = dma.done.wait (!%p1988_p2), %s1837_s30, 256  }
 0x355   : > { %2080 = vsyncadd (!%p1988_p2), %s1837_s30, 4294967040  ;;  %p15_p3 = scmp.ge.s32.totalorder %s2162_s24, 4   ;;  %s2614_s18 = smov %s2087_s19 }
 0x356   : > { %s2615_s19 = smov %s2091_s20  ;;  %s2616_s20 = smov %s2173_s27 }
 0x357   : > { %s2617_s21 = smov %s2162_s24  ;;  %17 = sbr.rel (!%p15_p3) target bundleno = 3 (0x3), region = 100 }
 0x35e   :  { %1842 = vsyncpa [#allocation3], 1 }
 0x35f   :  { %1844 = vsyncpa [#allocation3 + $0x1], 1 }

</bundles_post_ra>
